<compile_context>
chip_gen: v6e
topology: v6e:2x2x1
jax: 0.10.0
libtpu: 0.0.40
codegen_flags: <defaults>
</compile_context>

<pallas_src>
import jax
import jax.numpy as jnp
from jax import lax
from jax.experimental import pallas as pl
from jax.experimental.pallas import tpu as pltpu

_MIB = 1024 * 1024


def _tpu_vmem_and_cores():
    """(per-core VMEM bytes, TensorCores per chip) with safe fallbacks."""
    vmem = 128 * _MIB
    cores = 1
    try:
        info = pltpu.get_tpu_info()
        for name in ("vmem_capacity_bytes", "vmem_bytes", "vmem_size_bytes"):
            v = getattr(info, name, None)
            if v:
                vmem = int(v)
                break
        for name in ("num_tensorcores", "tensorcore_count", "num_cores", "core_count"):
            v = getattr(info, name, None)
            if v:
                cores = int(v)
                break
        # v7x heuristic: 64 MiB VMEM per TensorCore implies the 2-TC generation.
        if cores == 1 and vmem <= 64 * _MIB:
            cores = 2
    except Exception:
        pass
    return vmem, cores


def _choose_tile_rows(np_rows, c_lanes, itemsize, vmem_cap_bytes):
    """Largest packed-row tile fitting a generation-aware VMEM budget."""
    sub = max(8, 32 // int(itemsize))           # sublane packing of the score dtype
    c_pad = ((c_lanes + 127) // 128) * 128      # lane padding of the score tile
    # Per packed row: double-buffered score tile (native dtype) + double-buffered
    # lane-padded int32 target tile + ~8 dense f32/int32 in-kernel working copies
    # (f32 upcast, exp, the segment broadcast chains, masks, loss contribution).
    per_row = 2 * c_pad * int(itemsize) + 2 * 128 * 4 + 8 * c_pad * 4
    if vmem_cap_bytes <= 64 * _MIB:             # v7x: 64 MiB / TC, keep headroom
        budget, max_tile = 18 * _MIB, 2048
    else:                                       # v5e / v6e: 128 MiB / TC
        budget, max_tile = 48 * _MIB, 4096
    rows = max(sub, budget // per_row)
    tile = max(sub, (min(max_tile, rows) // sub) * sub)
    n_round = ((np_rows + sub - 1) // sub) * sub
    return min(tile, max(n_round, sub))


def _make_ce_kernel(np_rows, n_classes, k, tile_rows, blocks_per_shard):
    L = n_classes
    C = k * L
    l_pow2 = (L & (L - 1)) == 0

    def seg_mask(lane, g):
        lo, hi = g * L, (g + 1) * L
        if g == 0:
            return lane < hi
        if g == k - 1:
            return lane >= lo
        return (lane >= lo) & (lane < hi)

    def tile_sums(scores_ref, targets_ref, row0, mask_rows):
        """Per-tile (sum of CE losses, count of valid targets) as f32 scalars."""
        s = scores_ref[...].astype(jnp.float32)          # (P, C), f32 only in VMEM
        t = targets_ref[...]                              # (P, k) int32
        P = s.shape[0]
        lane = lax.broadcasted_iota(jnp.int32, (P, C), 1)

        if k == 1:
            # Unpacked path (L >= 65): rows are already reasonably lane-dense.
            # TODO(synk): block the class axis with an online logsumexp for
            # vocab-scale L so tile_rows stays large within v7x's 64 MiB VMEM.
            m = jnp.max(s, axis=-1, keepdims=True)
            lse = m + jnp.log(jnp.sum(jnp.exp(s - m), axis=-1, keepdims=True))
            tgt = jnp.sum(jnp.where(lane == t, s, 0.0), axis=-1, keepdims=True)
            valid = (t >= 0) & (t < L)                     # (P, 1)
            if mask_rows:
                rid = row0 + lax.broadcasted_iota(jnp.int32, (P, 1), 0)
                valid = valid & (rid < np_rows)
            loss_sum = jnp.sum(jnp.where(valid, lse - tgt, 0.0))
            cnt_sum = jnp.sum(jnp.where(valid, 1.0, 0.0))
            return loss_sum, cnt_sum

        # --- packed path: each lane row holds k original rows of L classes ---
        # Per-segment max broadcast back to its lanes (select chain).
        m_lanes = None
        for g in range(k):
            mask = seg_mask(lane, g)
            m_g = jnp.max(jnp.where(mask, s, -jnp.inf), axis=-1, keepdims=True)
            m_lanes = jnp.where(mask, m_g, 0.0 if m_lanes is None else m_lanes)

        e = jnp.exp(s - m_lanes)                           # one dense EUP pass

        # Per-segment sum of exp and per-segment target id, broadcast to lanes.
        sum_lanes = None
        t_lanes = None
        base_lanes = None
        for g in range(k):
            mask = seg_mask(lane, g)
            s_g = jnp.sum(jnp.where(mask, e, 0.0), axis=-1, keepdims=True)
            sum_lanes = jnp.where(mask, s_g, 1.0 if sum_lanes is None else sum_lanes)
            t_lanes = jnp.where(mask, t[:, g:g + 1],
                                0 if t_lanes is None else t_lanes)
            if not l_pow2:
                base_lanes = jnp.where(mask, g * L,
                                       0 if base_lanes is None else base_lanes)

        lane_rel = (lane & (L - 1)) if l_pow2 else (lane - base_lanes)
        lse_lanes = m_lanes + jnp.log(sum_lanes)           # segment lse on each lane
        valid = (t_lanes >= 0) & (t_lanes < L)             # per-lane target validity
        if mask_rows:
            rid = row0 + lax.broadcasted_iota(jnp.int32, (P, 1), 0)
            valid = valid & (rid < np_rows)
        match = lane_rel == t_lanes                        # one-hot target lane / seg
        tmask = (match & valid) if mask_rows else match
        vr = valid & (lane_rel == 0)                       # one rep lane per orig row
        loss_sum = jnp.sum(jnp.where(vr, lse_lanes, 0.0) - jnp.where(tmask, s, 0.0))
        cnt_sum = jnp.sum(jnp.where(vr, 1.0, 0.0))
        return loss_sum, cnt_sum

    def kernel(scores_ref, targets_ref, out_ref):
        c = pl.program_id(0)            # shard axis ("parallel")
        i = pl.program_id(1)            # row-tile axis ("arbitrary", reduction)

        @pl.when(i == 0)
        def _init():
            out_ref[...] = jnp.zeros_like(out_ref)

        # Global start row of this tile from program ids (independent of the
        # block-index clamp used for over-covered shard blocks).
        row0 = (c * blocks_per_shard + i) * tile_rows

        def accumulate(mask_rows):
            loss_sum, cnt_sum = tile_sums(scores_ref, targets_ref, row0, mask_rows)
            rr = lax.broadcasted_iota(jnp.int32, (8, 128), 0)
            cc = lax.broadcasted_iota(jnp.int32, (8, 128), 1)
            out_ref[...] += jnp.where(
                (rr == 0) & (cc == 0), loss_sum,
                jnp.where((rr == 0) & (cc == 1), cnt_sum, 0.0))

        # Hot path: every row of the tile is a real packed row -> no row masking.
        @pl.when(row0 + tile_rows <= np_rows)
        def _full_tile():
            accumulate(False)

        # Tail path: the tile straddles the end of the packed row range.
        @pl.when(jnp.logical_and(row0 < np_rows, row0 + tile_rows > np_rows))
        def _partial_tile():
            accumulate(True)
        # Fully out-of-range blocks (clamped duplicates on an over-covered shard)
        # fall through both branches and do no compute (and no extra DMA, since the
        # clamped block index repeats the previous one).

    return kernel


def greedy_loss(scores, targets, *, tile_rows=None, num_shards=None):
    """Mean cross-entropy over (B, T, L) scores and (B, T) integer targets."""
    B, T, L = scores.shape
    N = B * T

    vmem_cap, n_cores = _tpu_vmem_and_cores()

    # Lane packing: fold k consecutive rows into one 128-lane row when L < 128.
    k = max(1, min(128 // L, 16)) if L < 128 else 1
    pad = (-N) % k
    s2 = scores.reshape(N, L)                  # native dtype; no wrapper upcast
    t2 = targets.reshape(N).astype(jnp.int32)
    if pad:
        # TODO(synk): handle the ragged tail without this (whole-array) pad copy.
        s2 = jnp.concatenate([s2, jnp.zeros((pad, L), s2.dtype)], axis=0)
        t2 = jnp.concatenate([t2, jnp.full((pad,), -1, jnp.int32)], axis=0)
    Np = (N + pad) // k
    C = k * L
    sp = s2.reshape(Np, C)                     # contiguous view: no copy
    tp = t2.reshape(Np, k)

    itemsize = jnp.dtype(sp.dtype).itemsize
    sub = max(8, 32 // int(itemsize))
    if tile_rows is None:
        tile_rows = _choose_tile_rows(Np, C, itemsize, vmem_cap)
    else:
        tile_rows = max(sub, ((int(tile_rows) + sub - 1) // sub) * sub)

    total_blocks = pl.cdiv(Np, tile_rows)
    if num_shards is None:
        num_shards = 2 if n_cores >= 2 else 1   # 2-way split only on 2-TC parts (v7x)
    num_shards = max(1, min(int(num_shards), total_blocks))
    blocks_per_shard = pl.cdiv(total_blocks, num_shards)
    last_block = max(total_blocks - 1, 0)

    def row_block_idx(c, i):
        # Clamp so an over-covered shard re-points at the last real block (same index
        # as its previous step -> no extra DMA); the kernel skips that block's compute.
        return jnp.minimum(c * blocks_per_shard + i, last_block)

    cost = pl.CostEstimate(
        flops=int(12 * N * L),
        transcendentals=int(N * L + N),
        bytes_accessed=int(N * L * itemsize + N * 4 + num_shards * 8 * 128 * 4),
    )
    vmem_limit = 28 * _MIB if vmem_cap <= 64 * _MIB else 80 * _MIB

    out = pl.pallas_call(
        _make_ce_kernel(Np, L, k, tile_rows, blocks_per_shard),
        out_shape=jax.ShapeDtypeStruct((num_shards * 8, 128), jnp.float32),
        grid_spec=pltpu.PrefetchScalarGridSpec(
            num_scalar_prefetch=0,
            grid=(num_shards, blocks_per_shard),
            in_specs=[
                pl.BlockSpec((tile_rows, C), lambda c, i: (row_block_idx(c, i), 0)),
                pl.BlockSpec((tile_rows, k), lambda c, i: (row_block_idx(c, i), 0)),
            ],
            out_specs=pl.BlockSpec((8, 128), lambda c, i: (c, 0)),
        ),
        compiler_params=pltpu.CompilerParams(
            dimension_semantics=("parallel", "arbitrary"),
            vmem_limit_bytes=vmem_limit,
        ),
        cost_estimate=cost,
    )(sp, tp)

    loss_sum = jnp.sum(out[:, 0])     # only (0, 0)/(0, 1) of each shard block nonzero
    valid_cnt = jnp.sum(out[:, 1])
    # 0/0 -> NaN when every target is ignored, matching torch's mean-CE over empty set.
    return loss_sum / valid_cnt


def greedy_loss_ref(scores, targets):
    """Pure-JAX reference (matches nn.CrossEntropyLoss(reduction='mean'))."""
    B, T, L = scores.shape
    s = scores.reshape(-1, L).astype(jnp.float32)
    t = targets.reshape(-1)
    logp = jax.nn.log_softmax(s, axis=-1)
    nll = -jnp.take_along_axis(logp, t[:, None], axis=-1)[:, 0]
    return jnp.mean(nll)


if __name__ == "__main__":
    key = jax.random.PRNGKey(0)
    k_s, k_t = jax.random.split(key)

    # 1) Base case implied by the module: (B, T, L) = (2, 8, 32), f32 (packed path).
    B, T, L = 2, 8, 32
    scores = jax.random.normal(k_s, (B, T, L), dtype=jnp.float32)
    targets = jax.random.randint(k_t, (B, T), 0, L, dtype=jnp.int32)
    loss = jax.block_until_ready(greedy_loss(scores, targets))
    ref = jax.block_until_ready(greedy_loss_ref(scores, targets))
    assert jnp.allclose(loss, ref, rtol=1e-5, atol=1e-5), (loss, ref)

    # 2) Odd N (wrapper pad + in-kernel tail mask), forced small tile, forced 2 shards
    #    with an odd block count (exercises the clamped / skipped duplicate block).
    B2, T2 = 2, 67                      # N = 134 -> pad 2 -> 34 packed rows -> 5 blocks
    scores2 = jax.random.normal(k_s, (B2, T2, L), dtype=jnp.float32)
    targets2 = jax.random.randint(k_t, (B2, T2), 0, L, dtype=jnp.int32)
    loss2 = jax.block_until_ready(
        greedy_loss(scores2, targets2, tile_rows=8, num_shards=2))
    ref2 = jax.block_until_ready(greedy_loss_ref(scores2, targets2))
    assert jnp.allclose(loss2, ref2, rtol=1e-5, atol=1e-5), (loss2, ref2)

    # 3) Unpacked path (L >= 128) with bf16 scores (native-dtype HBM read, f32 in-kernel).
    B3, T3, L3 = 2, 5, 160
    scores3 = jax.random.normal(k_s, (B3, T3, L3), dtype=jnp.float32).astype(jnp.bfloat16)
    targets3 = jax.random.randint(k_t, (B3, T3), 0, L3, dtype=jnp.int32)
    loss3 = jax.block_until_ready(greedy_loss(scores3, targets3))
    ref3 = jax.block_until_ready(greedy_loss_ref(scores3, targets3))
    assert jnp.allclose(loss3, ref3, rtol=1e-5, atol=2e-5), (loss3, ref3)

    print("KERNEL_OK")
</pallas_src>

<mosaic_0001>
module attributes {stable_mosaic.version = 11 : i64} {
  func.func @kernel(%arg0: i32, %arg1: i32, %arg2: memref<8x128xf32, #tpu.memory_space<vmem>>, %arg3: memref<8x4xi32, #tpu.memory_space<vmem>>, %arg4: memref<8x128xf32, #tpu.memory_space<vmem>>) attributes {dimension_semantics = [#tpu.dimension_semantics<parallel>, #tpu.dimension_semantics<arbitrary>], iteration_bounds = array<i64: 1, 1>, scalar_prefetch = 0 : i64, scratch_operands = 0 : i64, tpu.core_type = #tpu.core_type<tc>, window_params = [{transform_indices = @transform_0, window_bounds = array<i64: 8, 128>}, {transform_indices = @transform_1, window_bounds = array<i64: 8, 4>}, {transform_indices = @transform_2, window_bounds = array<i64: 8, 128>}]} {
    %c0_i32 = arith.constant 0 : i32
    %0 = arith.cmpi eq, %arg1, %c0_i32 : i32
    %1 = arith.extui %0 : i1 to i32
    %c0_i32_0 = arith.constant 0 : i32
    %2 = arith.cmpi ne, %1, %c0_i32_0 : i32
    scf.if %2 {
      %cst = arith.constant 0.000000e+00 : f32
      %16 = vector.broadcast %cst : f32 to vector<8x128xf32>
      %c0 = arith.constant 0 : index
      %c0_7 = arith.constant 0 : index
      %17 = vector.load %arg4[%c0, %c0_7] : memref<8x128xf32, #tpu.memory_space<vmem>>, vector<8x128xf32>
      tpu.vector_store %arg4[%c0, %c0_7], %16 {strides = array<i32>} : memref<8x128xf32, #tpu.memory_space<vmem>>, vector<8x128xf32>,
    } else {
    }
    %c1_i32 = arith.constant 1 : i32
    %3 = arith.muli %arg0, %c1_i32 : i32
    %4 = arith.addi %3, %arg1 : i32
    %c8_i32 = arith.constant 8 : i32
    %5 = arith.muli %4, %c8_i32 : i32
    %c8_i32_1 = arith.constant 8 : i32
    %6 = arith.addi %5, %c8_i32_1 : i32
    %c4_i32 = arith.constant 4 : i32
    %7 = arith.cmpi sle, %6, %c4_i32 : i32
    %8 = arith.extui %7 : i1 to i32
    %c0_i32_2 = arith.constant 0 : i32
    %9 = arith.cmpi ne, %8, %c0_i32_2 : i32
    scf.if %9 {
      %c0 = arith.constant 0 : index
      %c0_7 = arith.constant 0 : index
      %16 = vector.load %arg2[%c0, %c0_7] : memref<8x128xf32, #tpu.memory_space<vmem>>, vector<8x128xf32>
      %c0_8 = arith.constant 0 : index
      %c0_9 = arith.constant 0 : index
      %17 = vector.load %arg3[%c0_8, %c0_9] : memref<8x4xi32, #tpu.memory_space<vmem>>, vector<8x4xi32>
      %18 = tpu.iota {dimensions = array<i32: 1>} : vector<8x128xi32>
      %c32_i32 = arith.constant 32 : i32
      %19 = vector.broadcast %c32_i32 : i32 to vector<8x128xi32>
      %20 = arith.cmpi slt, %18, %19 : vector<8x128xi32>
      %cst = arith.constant 0xFF800000 : f32
      %21 = vector.broadcast %cst : f32 to vector<8x128xf32>
      %22 = arith.select %20, %16, %21 : vector<8x128xi1>, vector<8x128xf32>
      %cst_10 = arith.constant dense<0xFF800000> : vector<8xf32>
      %23 = vector.multi_reduction <maximumf>, %22, %cst_10 [1] : vector<8x128xf32> to vector<8xf32>
      %24 = vector.shape_cast %23 : vector<8xf32> to vector<8x1xf32>
      %cst_11 = arith.constant 0.000000e+00 : f32
      %25 = vector.shape_cast %24 : vector<8x1xf32> to vector<8x1xf32>
      %26 = vector.broadcast %25 : vector<8x1xf32> to vector<8x128xf32>
      %27 = vector.broadcast %cst_11 : f32 to vector<8x128xf32>
      %28 = arith.select %20, %26, %27 : vector<8x128xi1>, vector<8x128xf32>
      %c32_i32_12 = arith.constant 32 : i32
      %29 = vector.broadcast %c32_i32_12 : i32 to vector<8x128xi32>
      %30 = arith.cmpi sge, %18, %29 : vector<8x128xi32>
      %c64_i32 = arith.constant 64 : i32
      %31 = vector.broadcast %c64_i32 : i32 to vector<8x128xi32>
      %32 = arith.cmpi slt, %18, %31 : vector<8x128xi32>
      %33 = arith.andi %30, %32 : vector<8x128xi1>
      %cst_13 = arith.constant 0xFF800000 : f32
      %34 = vector.broadcast %cst_13 : f32 to vector<8x128xf32>
      %35 = arith.select %33, %16, %34 : vector<8x128xi1>, vector<8x128xf32>
      %cst_14 = arith.constant dense<0xFF800000> : vector<8xf32>
      %36 = vector.multi_reduction <maximumf>, %35, %cst_14 [1] : vector<8x128xf32> to vector<8xf32>
      %37 = vector.shape_cast %36 : vector<8xf32> to vector<8x1xf32>
      %38 = vector.shape_cast %37 : vector<8x1xf32> to vector<8x1xf32>
      %39 = vector.broadcast %38 : vector<8x1xf32> to vector<8x128xf32>
      %40 = arith.select %33, %39, %28 : vector<8x128xi1>, vector<8x128xf32>
      %c64_i32_15 = arith.constant 64 : i32
      %41 = vector.broadcast %c64_i32_15 : i32 to vector<8x128xi32>
      %42 = arith.cmpi sge, %18, %41 : vector<8x128xi32>
      %c96_i32 = arith.constant 96 : i32
      %43 = vector.broadcast %c96_i32 : i32 to vector<8x128xi32>
      %44 = arith.cmpi slt, %18, %43 : vector<8x128xi32>
      %45 = arith.andi %42, %44 : vector<8x128xi1>
      %cst_16 = arith.constant 0xFF800000 : f32
      %46 = vector.broadcast %cst_16 : f32 to vector<8x128xf32>
      %47 = arith.select %45, %16, %46 : vector<8x128xi1>, vector<8x128xf32>
      %cst_17 = arith.constant dense<0xFF800000> : vector<8xf32>
      %48 = vector.multi_reduction <maximumf>, %47, %cst_17 [1] : vector<8x128xf32> to vector<8xf32>
      %49 = vector.shape_cast %48 : vector<8xf32> to vector<8x1xf32>
      %50 = vector.shape_cast %49 : vector<8x1xf32> to vector<8x1xf32>
      %51 = vector.broadcast %50 : vector<8x1xf32> to vector<8x128xf32>
      %52 = arith.select %45, %51, %40 : vector<8x128xi1>, vector<8x128xf32>
      %c96_i32_18 = arith.constant 96 : i32
      %53 = vector.broadcast %c96_i32_18 : i32 to vector<8x128xi32>
      %54 = arith.cmpi sge, %18, %53 : vector<8x128xi32>
      %cst_19 = arith.constant 0xFF800000 : f32
      %55 = vector.broadcast %cst_19 : f32 to vector<8x128xf32>
      %56 = arith.select %54, %16, %55 : vector<8x128xi1>, vector<8x128xf32>
      %cst_20 = arith.constant dense<0xFF800000> : vector<8xf32>
      %57 = vector.multi_reduction <maximumf>, %56, %cst_20 [1] : vector<8x128xf32> to vector<8xf32>
      %58 = vector.shape_cast %57 : vector<8xf32> to vector<8x1xf32>
      %59 = vector.shape_cast %58 : vector<8x1xf32> to vector<8x1xf32>
      %60 = vector.broadcast %59 : vector<8x1xf32> to vector<8x128xf32>
      %61 = arith.select %54, %60, %52 : vector<8x128xi1>, vector<8x128xf32>
      %62 = arith.subf %16, %61 : vector<8x128xf32>
      %63 = math.exp %62 : vector<8x128xf32>
      %c32_i32_21 = arith.constant 32 : i32
      %64 = vector.broadcast %c32_i32_21 : i32 to vector<8x128xi32>
      %65 = arith.cmpi slt, %18, %64 : vector<8x128xi32>
      %cst_22 = arith.constant 0.000000e+00 : f32
      %66 = vector.broadcast %cst_22 : f32 to vector<8x128xf32>
      %67 = arith.select %65, %63, %66 : vector<8x128xi1>, vector<8x128xf32>
      %cst_23 = arith.constant dense<0.000000e+00> : vector<8xf32>
      %68 = vector.multi_reduction <add>, %67, %cst_23 [1] : vector<8x128xf32> to vector<8xf32>
      %69 = vector.shape_cast %68 : vector<8xf32> to vector<8x1xf32>
      %cst_24 = arith.constant 1.000000e+00 : f32
      %70 = vector.shape_cast %69 : vector<8x1xf32> to vector<8x1xf32>
      %71 = vector.broadcast %70 : vector<8x1xf32> to vector<8x128xf32>
      %72 = vector.broadcast %cst_24 : f32 to vector<8x128xf32>
      %73 = arith.select %65, %71, %72 : vector<8x128xi1>, vector<8x128xf32>
      %74 = vector.extract_strided_slice %17 {offsets = [0, 0], sizes = [8, 1], strides = [1, 1]} : vector<8x4xi32> to vector<8x1xi32>
      %c0_i32_25 = arith.constant 0 : i32
      %75 = vector.shape_cast %74 : vector<8x1xi32> to vector<8x1xi32>
      %76 = vector.broadcast %75 : vector<8x1xi32> to vector<8x128xi32>
      %77 = vector.broadcast %c0_i32_25 : i32 to vector<8x128xi32>
      %78 = arith.select %65, %76, %77 : vector<8x128xi1>, vector<8x128xi32>
      %c32_i32_26 = arith.constant 32 : i32
      %79 = vector.broadcast %c32_i32_26 : i32 to vector<8x128xi32>
      %80 = arith.cmpi sge, %18, %79 : vector<8x128xi32>
      %c64_i32_27 = arith.constant 64 : i32
      %81 = vector.broadcast %c64_i32_27 : i32 to vector<8x128xi32>
      %82 = arith.cmpi slt, %18, %81 : vector<8x128xi32>
      %83 = arith.andi %80, %82 : vector<8x128xi1>
      %cst_28 = arith.constant 0.000000e+00 : f32
      %84 = vector.broadcast %cst_28 : f32 to vector<8x128xf32>
      %85 = arith.select %83, %63, %84 : vector<8x128xi1>, vector<8x128xf32>
      %cst_29 = arith.constant dense<0.000000e+00> : vector<8xf32>
      %86 = vector.multi_reduction <add>, %85, %cst_29 [1] : vector<8x128xf32> to vector<8xf32>
      %87 = vector.shape_cast %86 : vector<8xf32> to vector<8x1xf32>
      %88 = vector.shape_cast %87 : vector<8x1xf32> to vector<8x1xf32>
      %89 = vector.broadcast %88 : vector<8x1xf32> to vector<8x128xf32>
      %90 = arith.select %83, %89, %73 : vector<8x128xi1>, vector<8x128xf32>
      %91 = vector.extract_strided_slice %17 {offsets = [0, 1], sizes = [8, 1], strides = [1, 1]} : vector<8x4xi32> to vector<8x1xi32>
      %92 = vector.shape_cast %91 : vector<8x1xi32> to vector<8x1xi32>
      %93 = vector.broadcast %92 : vector<8x1xi32> to vector<8x128xi32>
      %94 = arith.select %83, %93, %78 : vector<8x128xi1>, vector<8x128xi32>
      %c64_i32_30 = arith.constant 64 : i32
      %95 = vector.broadcast %c64_i32_30 : i32 to vector<8x128xi32>
      %96 = arith.cmpi sge, %18, %95 : vector<8x128xi32>
      %c96_i32_31 = arith.constant 96 : i32
      %97 = vector.broadcast %c96_i32_31 : i32 to vector<8x128xi32>
      %98 = arith.cmpi slt, %18, %97 : vector<8x128xi32>
      %99 = arith.andi %96, %98 : vector<8x128xi1>
      %cst_32 = arith.constant 0.000000e+00 : f32
      %100 = vector.broadcast %cst_32 : f32 to vector<8x128xf32>
      %101 = arith.select %99, %63, %100 : vector<8x128xi1>, vector<8x128xf32>
      %cst_33 = arith.constant dense<0.000000e+00> : vector<8xf32>
      %102 = vector.multi_reduction <add>, %101, %cst_33 [1] : vector<8x128xf32> to vector<8xf32>
      %103 = vector.shape_cast %102 : vector<8xf32> to vector<8x1xf32>
      %104 = vector.shape_cast %103 : vector<8x1xf32> to vector<8x1xf32>
      %105 = vector.broadcast %104 : vector<8x1xf32> to vector<8x128xf32>
      %106 = arith.select %99, %105, %90 : vector<8x128xi1>, vector<8x128xf32>
      %107 = vector.extract_strided_slice %17 {offsets = [0, 2], sizes = [8, 1], strides = [1, 1]} : vector<8x4xi32> to vector<8x1xi32>
      %108 = vector.shape_cast %107 : vector<8x1xi32> to vector<8x1xi32>
      %109 = vector.broadcast %108 : vector<8x1xi32> to vector<8x128xi32>
      %110 = arith.select %99, %109, %94 : vector<8x128xi1>, vector<8x128xi32>
      %c96_i32_34 = arith.constant 96 : i32
      %111 = vector.broadcast %c96_i32_34 : i32 to vector<8x128xi32>
      %112 = arith.cmpi sge, %18, %111 : vector<8x128xi32>
      %cst_35 = arith.constant 0.000000e+00 : f32
      %113 = vector.broadcast %cst_35 : f32 to vector<8x128xf32>
      %114 = arith.select %112, %63, %113 : vector<8x128xi1>, vector<8x128xf32>
      %cst_36 = arith.constant dense<0.000000e+00> : vector<8xf32>
      %115 = vector.multi_reduction <add>, %114, %cst_36 [1] : vector<8x128xf32> to vector<8xf32>
      %116 = vector.shape_cast %115 : vector<8xf32> to vector<8x1xf32>
      %117 = vector.shape_cast %116 : vector<8x1xf32> to vector<8x1xf32>
      %118 = vector.broadcast %117 : vector<8x1xf32> to vector<8x128xf32>
      %119 = arith.select %112, %118, %106 : vector<8x128xi1>, vector<8x128xf32>
      %120 = vector.extract_strided_slice %17 {offsets = [0, 3], sizes = [8, 1], strides = [1, 1]} : vector<8x4xi32> to vector<8x1xi32>
      %121 = vector.shape_cast %120 : vector<8x1xi32> to vector<8x1xi32>
      %122 = vector.broadcast %121 : vector<8x1xi32> to vector<8x128xi32>
      %123 = arith.select %112, %122, %110 : vector<8x128xi1>, vector<8x128xi32>
      %c31_i32 = arith.constant 31 : i32
      %124 = vector.broadcast %c31_i32 : i32 to vector<8x128xi32>
      %125 = arith.andi %18, %124 : vector<8x128xi32>
      %126 = math.log %119 : vector<8x128xf32>
      %127 = arith.addf %61, %126 : vector<8x128xf32>
      %c0_i32_37 = arith.constant 0 : i32
      %128 = vector.broadcast %c0_i32_37 : i32 to vector<8x128xi32>
      %129 = arith.cmpi sge, %123, %128 : vector<8x128xi32>
      %c32_i32_38 = arith.constant 32 : i32
      %130 = vector.broadcast %c32_i32_38 : i32 to vector<8x128xi32>
      %131 = arith.cmpi slt, %123, %130 : vector<8x128xi32>
      %132 = arith.andi %129, %131 : vector<8x128xi1>
      %133 = arith.cmpi eq, %125, %123 : vector<8x128xi32>
      %c0_i32_39 = arith.constant 0 : i32
      %134 = vector.broadcast %c0_i32_39 : i32 to vector<8x128xi32>
      %135 = arith.cmpi eq, %125, %134 : vector<8x128xi32>
      %136 = arith.andi %132, %135 : vector<8x128xi1>
      %cst_40 = arith.constant 0.000000e+00 : f32
      %137 = vector.broadcast %cst_40 : f32 to vector<8x128xf32>
      %138 = arith.select %136, %127, %137 : vector<8x128xi1>, vector<8x128xf32>
      %cst_41 = arith.constant 0.000000e+00 : f32
      %139 = vector.broadcast %cst_41 : f32 to vector<8x128xf32>
      %140 = arith.select %133, %16, %139 : vector<8x128xi1>, vector<8x128xf32>
      %141 = arith.subf %138, %140 : vector<8x128xf32>
      %142 = vector.shape_cast %141 : vector<8x128xf32> to vector<1x8x128xf32>
      %cst_42 = arith.constant dense<0.000000e+00> : vector<1xf32>
      %143 = vector.multi_reduction <add>, %142, %cst_42 [1, 2] : vector<1x8x128xf32> to vector<1xf32>
      %144 = vector.shape_cast %143 : vector<1xf32> to vector<1x1x1xf32>
      %145 = vector.extract %144[0, 0, 0] : f32 from vector<1x1x1xf32>
      %cst_43 = arith.constant 1.000000e+00 : f32
      %cst_44 = arith.constant 0.000000e+00 : f32
      %146 = vector.broadcast %cst_43 : f32 to vector<8x128xf32>
      %147 = vector.broadcast %cst_44 : f32 to vector<8x128xf32>
      %148 = arith.select %136, %146, %147 : vector<8x128xi1>, vector<8x128xf32>
      %149 = vector.shape_cast %148 : vector<8x128xf32> to vector<1x8x128xf32>
      %cst_45 = arith.constant dense<0.000000e+00> : vector<1xf32>
      %150 = vector.multi_reduction <add>, %149, %cst_45 [1, 2] : vector<1x8x128xf32> to vector<1xf32>
      %151 = vector.shape_cast %150 : vector<1xf32> to vector<1x1x1xf32>
      %152 = vector.extract %151[0, 0, 0] : f32 from vector<1x1x1xf32>
      %153 = tpu.iota {dimensions = array<i32: 0>} : vector<8x128xi32>
      %154 = tpu.iota {dimensions = array<i32: 1>} : vector<8x128xi32>
      %c0_46 = arith.constant 0 : index
      %c0_47 = arith.constant 0 : index
      %155 = vector.load %arg4[%c0_46, %c0_47] : memref<8x128xf32, #tpu.memory_space<vmem>>, vector<8x128xf32>
      %c0_i32_48 = arith.constant 0 : i32
      %156 = vector.broadcast %c0_i32_48 : i32 to vector<8x128xi32>
      %157 = arith.cmpi eq, %153, %156 : vector<8x128xi32>
      %c0_i32_49 = arith.constant 0 : i32
      %158 = vector.broadcast %c0_i32_49 : i32 to vector<8x128xi32>
      %159 = arith.cmpi eq, %154, %158 : vector<8x128xi32>
      %160 = arith.andi %157, %159 : vector<8x128xi1>
      %c0_i32_50 = arith.constant 0 : i32
      %161 = vector.broadcast %c0_i32_50 : i32 to vector<8x128xi32>
      %162 = arith.cmpi eq, %153, %161 : vector<8x128xi32>
      %c1_i32_51 = arith.constant 1 : i32
      %163 = vector.broadcast %c1_i32_51 : i32 to vector<8x128xi32>
      %164 = arith.cmpi eq, %154, %163 : vector<8x128xi32>
      %165 = arith.andi %162, %164 : vector<8x128xi1>
      %cst_52 = arith.constant 0.000000e+00 : f32
      %166 = vector.broadcast %152 : f32 to vector<8x128xf32>
      %167 = vector.broadcast %cst_52 : f32 to vector<8x128xf32>
      %168 = arith.select %165, %166, %167 : vector<8x128xi1>, vector<8x128xf32>
      %169 = vector.broadcast %145 : f32 to vector<8x128xf32>
      %170 = arith.select %160, %169, %168 : vector<8x128xi1>, vector<8x128xf32>
      %171 = arith.addf %155, %170 : vector<8x128xf32>
      %c0_53 = arith.constant 0 : index
      %c0_54 = arith.constant 0 : index
      %172 = vector.load %arg4[%c0_53, %c0_54] : memref<8x128xf32, #tpu.memory_space<vmem>>, vector<8x128xf32>
      tpu.vector_store %arg4[%c0_53, %c0_54], %171 {strides = array<i32>} : memref<8x128xf32, #tpu.memory_space<vmem>>, vector<8x128xf32>,
    } else {
    }
    %c4_i32_3 = arith.constant 4 : i32
    %10 = arith.cmpi slt, %5, %c4_i32_3 : i32
    %c8_i32_4 = arith.constant 8 : i32
    %11 = arith.addi %5, %c8_i32_4 : i32
    %c4_i32_5 = arith.constant 4 : i32
    %12 = arith.cmpi sgt, %11, %c4_i32_5 : i32
    %13 = arith.andi %10, %12 : i1
    %14 = arith.extui %13 : i1 to i32
    %c0_i32_6 = arith.constant 0 : i32
    %15 = arith.cmpi ne, %14, %c0_i32_6 : i32
    scf.if %15 {
      %c0 = arith.constant 0 : index
      %c0_7 = arith.constant 0 : index
      %16 = vector.load %arg2[%c0, %c0_7] : memref<8x128xf32, #tpu.memory_space<vmem>>, vector<8x128xf32>
      %c0_8 = arith.constant 0 : index
      %c0_9 = arith.constant 0 : index
      %17 = vector.load %arg3[%c0_8, %c0_9] : memref<8x4xi32, #tpu.memory_space<vmem>>, vector<8x4xi32>
      %18 = tpu.iota {dimensions = array<i32: 1>} : vector<8x128xi32>
      %c32_i32 = arith.constant 32 : i32
      %19 = vector.broadcast %c32_i32 : i32 to vector<8x128xi32>
      %20 = arith.cmpi slt, %18, %19 : vector<8x128xi32>
      %cst = arith.constant 0xFF800000 : f32
      %21 = vector.broadcast %cst : f32 to vector<8x128xf32>
      %22 = arith.select %20, %16, %21 : vector<8x128xi1>, vector<8x128xf32>
      %cst_10 = arith.constant dense<0xFF800000> : vector<8xf32>
      %23 = vector.multi_reduction <maximumf>, %22, %cst_10 [1] : vector<8x128xf32> to vector<8xf32>
      %24 = vector.shape_cast %23 : vector<8xf32> to vector<8x1xf32>
      %cst_11 = arith.constant 0.000000e+00 : f32
      %25 = vector.shape_cast %24 : vector<8x1xf32> to vector<8x1xf32>
      %26 = vector.broadcast %25 : vector<8x1xf32> to vector<8x128xf32>
      %27 = vector.broadcast %cst_11 : f32 to vector<8x128xf32>
      %28 = arith.select %20, %26, %27 : vector<8x128xi1>, vector<8x128xf32>
      %c32_i32_12 = arith.constant 32 : i32
      %29 = vector.broadcast %c32_i32_12 : i32 to vector<8x128xi32>
      %30 = arith.cmpi sge, %18, %29 : vector<8x128xi32>
      %c64_i32 = arith.constant 64 : i32
      %31 = vector.broadcast %c64_i32 : i32 to vector<8x128xi32>
      %32 = arith.cmpi slt, %18, %31 : vector<8x128xi32>
      %33 = arith.andi %30, %32 : vector<8x128xi1>
      %cst_13 = arith.constant 0xFF800000 : f32
      %34 = vector.broadcast %cst_13 : f32 to vector<8x128xf32>
      %35 = arith.select %33, %16, %34 : vector<8x128xi1>, vector<8x128xf32>
      %cst_14 = arith.constant dense<0xFF800000> : vector<8xf32>
      %36 = vector.multi_reduction <maximumf>, %35, %cst_14 [1] : vector<8x128xf32> to vector<8xf32>
      %37 = vector.shape_cast %36 : vector<8xf32> to vector<8x1xf32>
      %38 = vector.shape_cast %37 : vector<8x1xf32> to vector<8x1xf32>
      %39 = vector.broadcast %38 : vector<8x1xf32> to vector<8x128xf32>
      %40 = arith.select %33, %39, %28 : vector<8x128xi1>, vector<8x128xf32>
      %c64_i32_15 = arith.constant 64 : i32
      %41 = vector.broadcast %c64_i32_15 : i32 to vector<8x128xi32>
      %42 = arith.cmpi sge, %18, %41 : vector<8x128xi32>
      %c96_i32 = arith.constant 96 : i32
      %43 = vector.broadcast %c96_i32 : i32 to vector<8x128xi32>
      %44 = arith.cmpi slt, %18, %43 : vector<8x128xi32>
      %45 = arith.andi %42, %44 : vector<8x128xi1>
      %cst_16 = arith.constant 0xFF800000 : f32
      %46 = vector.broadcast %cst_16 : f32 to vector<8x128xf32>
      %47 = arith.select %45, %16, %46 : vector<8x128xi1>, vector<8x128xf32>
      %cst_17 = arith.constant dense<0xFF800000> : vector<8xf32>
      %48 = vector.multi_reduction <maximumf>, %47, %cst_17 [1] : vector<8x128xf32> to vector<8xf32>
      %49 = vector.shape_cast %48 : vector<8xf32> to vector<8x1xf32>
      %50 = vector.shape_cast %49 : vector<8x1xf32> to vector<8x1xf32>
      %51 = vector.broadcast %50 : vector<8x1xf32> to vector<8x128xf32>
      %52 = arith.select %45, %51, %40 : vector<8x128xi1>, vector<8x128xf32>
      %c96_i32_18 = arith.constant 96 : i32
      %53 = vector.broadcast %c96_i32_18 : i32 to vector<8x128xi32>
      %54 = arith.cmpi sge, %18, %53 : vector<8x128xi32>
      %cst_19 = arith.constant 0xFF800000 : f32
      %55 = vector.broadcast %cst_19 : f32 to vector<8x128xf32>
      %56 = arith.select %54, %16, %55 : vector<8x128xi1>, vector<8x128xf32>
      %cst_20 = arith.constant dense<0xFF800000> : vector<8xf32>
      %57 = vector.multi_reduction <maximumf>, %56, %cst_20 [1] : vector<8x128xf32> to vector<8xf32>
      %58 = vector.shape_cast %57 : vector<8xf32> to vector<8x1xf32>
      %59 = vector.shape_cast %58 : vector<8x1xf32> to vector<8x1xf32>
      %60 = vector.broadcast %59 : vector<8x1xf32> to vector<8x128xf32>
      %61 = arith.select %54, %60, %52 : vector<8x128xi1>, vector<8x128xf32>
      %62 = arith.subf %16, %61 : vector<8x128xf32>
      %63 = math.exp %62 : vector<8x128xf32>
      %c32_i32_21 = arith.constant 32 : i32
      %64 = vector.broadcast %c32_i32_21 : i32 to vector<8x128xi32>
      %65 = arith.cmpi slt, %18, %64 : vector<8x128xi32>
      %cst_22 = arith.constant 0.000000e+00 : f32
      %66 = vector.broadcast %cst_22 : f32 to vector<8x128xf32>
      %67 = arith.select %65, %63, %66 : vector<8x128xi1>, vector<8x128xf32>
      %cst_23 = arith.constant dense<0.000000e+00> : vector<8xf32>
      %68 = vector.multi_reduction <add>, %67, %cst_23 [1] : vector<8x128xf32> to vector<8xf32>
      %69 = vector.shape_cast %68 : vector<8xf32> to vector<8x1xf32>
      %cst_24 = arith.constant 1.000000e+00 : f32
      %70 = vector.shape_cast %69 : vector<8x1xf32> to vector<8x1xf32>
      %71 = vector.broadcast %70 : vector<8x1xf32> to vector<8x128xf32>
      %72 = vector.broadcast %cst_24 : f32 to vector<8x128xf32>
      %73 = arith.select %65, %71, %72 : vector<8x128xi1>, vector<8x128xf32>
      %74 = vector.extract_strided_slice %17 {offsets = [0, 0], sizes = [8, 1], strides = [1, 1]} : vector<8x4xi32> to vector<8x1xi32>
      %c0_i32_25 = arith.constant 0 : i32
      %75 = vector.shape_cast %74 : vector<8x1xi32> to vector<8x1xi32>
      %76 = vector.broadcast %75 : vector<8x1xi32> to vector<8x128xi32>
      %77 = vector.broadcast %c0_i32_25 : i32 to vector<8x128xi32>
      %78 = arith.select %65, %76, %77 : vector<8x128xi1>, vector<8x128xi32>
      %c32_i32_26 = arith.constant 32 : i32
      %79 = vector.broadcast %c32_i32_26 : i32 to vector<8x128xi32>
      %80 = arith.cmpi sge, %18, %79 : vector<8x128xi32>
      %c64_i32_27 = arith.constant 64 : i32
      %81 = vector.broadcast %c64_i32_27 : i32 to vector<8x128xi32>
      %82 = arith.cmpi slt, %18, %81 : vector<8x128xi32>
      %83 = arith.andi %80, %82 : vector<8x128xi1>
      %cst_28 = arith.constant 0.000000e+00 : f32
      %84 = vector.broadcast %cst_28 : f32 to vector<8x128xf32>
      %85 = arith.select %83, %63, %84 : vector<8x128xi1>, vector<8x128xf32>
      %cst_29 = arith.constant dense<0.000000e+00> : vector<8xf32>
      %86 = vector.multi_reduction <add>, %85, %cst_29 [1] : vector<8x128xf32> to vector<8xf32>
      %87 = vector.shape_cast %86 : vector<8xf32> to vector<8x1xf32>
      %88 = vector.shape_cast %87 : vector<8x1xf32> to vector<8x1xf32>
      %89 = vector.broadcast %88 : vector<8x1xf32> to vector<8x128xf32>
      %90 = arith.select %83, %89, %73 : vector<8x128xi1>, vector<8x128xf32>
      %91 = vector.extract_strided_slice %17 {offsets = [0, 1], sizes = [8, 1], strides = [1, 1]} : vector<8x4xi32> to vector<8x1xi32>
      %92 = vector.shape_cast %91 : vector<8x1xi32> to vector<8x1xi32>
      %93 = vector.broadcast %92 : vector<8x1xi32> to vector<8x128xi32>
      %94 = arith.select %83, %93, %78 : vector<8x128xi1>, vector<8x128xi32>
      %c64_i32_30 = arith.constant 64 : i32
      %95 = vector.broadcast %c64_i32_30 : i32 to vector<8x128xi32>
      %96 = arith.cmpi sge, %18, %95 : vector<8x128xi32>
      %c96_i32_31 = arith.constant 96 : i32
      %97 = vector.broadcast %c96_i32_31 : i32 to vector<8x128xi32>
      %98 = arith.cmpi slt, %18, %97 : vector<8x128xi32>
      %99 = arith.andi %96, %98 : vector<8x128xi1>
      %cst_32 = arith.constant 0.000000e+00 : f32
      %100 = vector.broadcast %cst_32 : f32 to vector<8x128xf32>
      %101 = arith.select %99, %63, %100 : vector<8x128xi1>, vector<8x128xf32>
      %cst_33 = arith.constant dense<0.000000e+00> : vector<8xf32>
      %102 = vector.multi_reduction <add>, %101, %cst_33 [1] : vector<8x128xf32> to vector<8xf32>
      %103 = vector.shape_cast %102 : vector<8xf32> to vector<8x1xf32>
      %104 = vector.shape_cast %103 : vector<8x1xf32> to vector<8x1xf32>
      %105 = vector.broadcast %104 : vector<8x1xf32> to vector<8x128xf32>
      %106 = arith.select %99, %105, %90 : vector<8x128xi1>, vector<8x128xf32>
      %107 = vector.extract_strided_slice %17 {offsets = [0, 2], sizes = [8, 1], strides = [1, 1]} : vector<8x4xi32> to vector<8x1xi32>
      %108 = vector.shape_cast %107 : vector<8x1xi32> to vector<8x1xi32>
      %109 = vector.broadcast %108 : vector<8x1xi32> to vector<8x128xi32>
      %110 = arith.select %99, %109, %94 : vector<8x128xi1>, vector<8x128xi32>
      %c96_i32_34 = arith.constant 96 : i32
      %111 = vector.broadcast %c96_i32_34 : i32 to vector<8x128xi32>
      %112 = arith.cmpi sge, %18, %111 : vector<8x128xi32>
      %cst_35 = arith.constant 0.000000e+00 : f32
      %113 = vector.broadcast %cst_35 : f32 to vector<8x128xf32>
      %114 = arith.select %112, %63, %113 : vector<8x128xi1>, vector<8x128xf32>
      %cst_36 = arith.constant dense<0.000000e+00> : vector<8xf32>
      %115 = vector.multi_reduction <add>, %114, %cst_36 [1] : vector<8x128xf32> to vector<8xf32>
      %116 = vector.shape_cast %115 : vector<8xf32> to vector<8x1xf32>
      %117 = vector.shape_cast %116 : vector<8x1xf32> to vector<8x1xf32>
      %118 = vector.broadcast %117 : vector<8x1xf32> to vector<8x128xf32>
      %119 = arith.select %112, %118, %106 : vector<8x128xi1>, vector<8x128xf32>
      %120 = vector.extract_strided_slice %17 {offsets = [0, 3], sizes = [8, 1], strides = [1, 1]} : vector<8x4xi32> to vector<8x1xi32>
      %121 = vector.shape_cast %120 : vector<8x1xi32> to vector<8x1xi32>
      %122 = vector.broadcast %121 : vector<8x1xi32> to vector<8x128xi32>
      %123 = arith.select %112, %122, %110 : vector<8x128xi1>, vector<8x128xi32>
      %c31_i32 = arith.constant 31 : i32
      %124 = vector.broadcast %c31_i32 : i32 to vector<8x128xi32>
      %125 = arith.andi %18, %124 : vector<8x128xi32>
      %126 = math.log %119 : vector<8x128xf32>
      %127 = arith.addf %61, %126 : vector<8x128xf32>
      %c0_i32_37 = arith.constant 0 : i32
      %128 = vector.broadcast %c0_i32_37 : i32 to vector<8x128xi32>
      %129 = arith.cmpi sge, %123, %128 : vector<8x128xi32>
      %c32_i32_38 = arith.constant 32 : i32
      %130 = vector.broadcast %c32_i32_38 : i32 to vector<8x128xi32>
      %131 = arith.cmpi slt, %123, %130 : vector<8x128xi32>
      %132 = arith.andi %129, %131 : vector<8x128xi1>
      %133 = tpu.iota {dimensions = array<i32: 0>} : vector<8x1xi32>
      %134 = vector.broadcast %5 : i32 to vector<8x1xi32>
      %135 = arith.addi %134, %133 : vector<8x1xi32>
      %c4_i32_39 = arith.constant 4 : i32
      %136 = vector.broadcast %c4_i32_39 : i32 to vector<8x1xi32>
      %137 = arith.cmpi slt, %135, %136 : vector<8x1xi32>
      %138 = vector.broadcast %137 : vector<8x1xi1> to vector<8x128xi1>
      %139 = arith.andi %132, %138 : vector<8x128xi1>
      %140 = arith.cmpi eq, %125, %123 : vector<8x128xi32>
      %141 = arith.andi %140, %139 : vector<8x128xi1>
      %c0_i32_40 = arith.constant 0 : i32
      %142 = vector.broadcast %c0_i32_40 : i32 to vector<8x128xi32>
      %143 = arith.cmpi eq, %125, %142 : vector<8x128xi32>
      %144 = arith.andi %139, %143 : vector<8x128xi1>
      %cst_41 = arith.constant 0.000000e+00 : f32
      %145 = vector.broadcast %cst_41 : f32 to vector<8x128xf32>
      %146 = arith.select %144, %127, %145 : vector<8x128xi1>, vector<8x128xf32>
      %cst_42 = arith.constant 0.000000e+00 : f32
      %147 = vector.broadcast %cst_42 : f32 to vector<8x128xf32>
      %148 = arith.select %141, %16, %147 : vector<8x128xi1>, vector<8x128xf32>
      %149 = arith.subf %146, %148 : vector<8x128xf32>
      %150 = vector.shape_cast %149 : vector<8x128xf32> to vector<1x8x128xf32>
      %cst_43 = arith.constant dense<0.000000e+00> : vector<1xf32>
      %151 = vector.multi_reduction <add>, %150, %cst_43 [1, 2] : vector<1x8x128xf32> to vector<1xf32>
      %152 = vector.shape_cast %151 : vector<1xf32> to vector<1x1x1xf32>
      %153 = vector.extract %152[0, 0, 0] : f32 from vector<1x1x1xf32>
      %cst_44 = arith.constant 1.000000e+00 : f32
      %cst_45 = arith.constant 0.000000e+00 : f32
      %154 = vector.broadcast %cst_44 : f32 to vector<8x128xf32>
      %155 = vector.broadcast %cst_45 : f32 to vector<8x128xf32>
      %156 = arith.select %144, %154, %155 : vector<8x128xi1>, vector<8x128xf32>
      %157 = vector.shape_cast %156 : vector<8x128xf32> to vector<1x8x128xf32>
      %cst_46 = arith.constant dense<0.000000e+00> : vector<1xf32>
      %158 = vector.multi_reduction <add>, %157, %cst_46 [1, 2] : vector<1x8x128xf32> to vector<1xf32>
      %159 = vector.shape_cast %158 : vector<1xf32> to vector<1x1x1xf32>
      %160 = vector.extract %159[0, 0, 0] : f32 from vector<1x1x1xf32>
      %161 = tpu.iota {dimensions = array<i32: 0>} : vector<8x128xi32>
      %162 = tpu.iota {dimensions = array<i32: 1>} : vector<8x128xi32>
      %c0_47 = arith.constant 0 : index
      %c0_48 = arith.constant 0 : index
      %163 = vector.load %arg4[%c0_47, %c0_48] : memref<8x128xf32, #tpu.memory_space<vmem>>, vector<8x128xf32>
      %c0_i32_49 = arith.constant 0 : i32
      %164 = vector.broadcast %c0_i32_49 : i32 to vector<8x128xi32>
      %165 = arith.cmpi eq, %161, %164 : vector<8x128xi32>
      %c0_i32_50 = arith.constant 0 : i32
      %166 = vector.broadcast %c0_i32_50 : i32 to vector<8x128xi32>
      %167 = arith.cmpi eq, %162, %166 : vector<8x128xi32>
      %168 = arith.andi %165, %167 : vector<8x128xi1>
      %c0_i32_51 = arith.constant 0 : i32
      %169 = vector.broadcast %c0_i32_51 : i32 to vector<8x128xi32>
      %170 = arith.cmpi eq, %161, %169 : vector<8x128xi32>
      %c1_i32_52 = arith.constant 1 : i32
      %171 = vector.broadcast %c1_i32_52 : i32 to vector<8x128xi32>
      %172 = arith.cmpi eq, %162, %171 : vector<8x128xi32>
      %173 = arith.andi %170, %172 : vector<8x128xi1>
      %cst_53 = arith.constant 0.000000e+00 : f32
      %174 = vector.broadcast %160 : f32 to vector<8x128xf32>
      %175 = vector.broadcast %cst_53 : f32 to vector<8x128xf32>
      %176 = arith.select %173, %174, %175 : vector<8x128xi1>, vector<8x128xf32>
      %177 = vector.broadcast %153 : f32 to vector<8x128xf32>
      %178 = arith.select %168, %177, %176 : vector<8x128xi1>, vector<8x128xf32>
      %179 = arith.addf %163, %178 : vector<8x128xf32>
      %c0_54 = arith.constant 0 : index
      %c0_55 = arith.constant 0 : index
      %180 = vector.load %arg4[%c0_54, %c0_55] : memref<8x128xf32, #tpu.memory_space<vmem>>, vector<8x128xf32>
      tpu.vector_store %arg4[%c0_54, %c0_55], %179 {strides = array<i32>} : memref<8x128xf32, #tpu.memory_space<vmem>>, vector<8x128xf32>,
    } else {
    }
    return
  }
  func.func @transform_0(%arg0: i32, %arg1: i32) -> (i32, i32) {
    %c1_i32 = arith.constant 1 : i32
    %0 = arith.muli %arg0, %c1_i32 : i32
    %1 = arith.addi %0, %arg1 : i32
    %c0_i32 = arith.constant 0 : i32
    %2 = arith.minsi %1, %c0_i32 : i32
    %c0_i32_0 = arith.constant 0 : i32
    %c0_i32_1 = arith.constant 0 : i32
    return %2, %c0_i32_0 : i32, i32
  }
  func.func @transform_1(%arg0: i32, %arg1: i32) -> (i32, i32) {
    %c1_i32 = arith.constant 1 : i32
    %0 = arith.muli %arg0, %c1_i32 : i32
    %1 = arith.addi %0, %arg1 : i32
    %c0_i32 = arith.constant 0 : i32
    %2 = arith.minsi %1, %c0_i32 : i32
    %c0_i32_0 = arith.constant 0 : i32
    %c0_i32_1 = arith.constant 0 : i32
    return %2, %c0_i32_0 : i32, i32
  }
  func.func @transform_2(%arg0: i32, %arg1: i32) -> (i32, i32) {
    %c0_i32 = arith.constant 0 : i32
    %c0_i32_0 = arith.constant 0 : i32
    return %arg0, %c0_i32 : i32, i32
  }
}

</mosaic_0001>

<bundles_post_ra>
// kernel: tpu_custom_call.1
= control target key start
LH: loop header
LB: loop body
LE: loop exit
PB: predicated region body
PF: predicated region fallthrough
CT: control target
= control target key end

     0   :  { %7 = vsyncpa [#allocation3], 0  ;;  %s527_s0 = inlined_call_operand.hbm [shape: f32[4,128], index: 0, kind: input, shape index: {}]   ;;  %s528_s1 = inlined_call_operand.hbm [shape: s32[4,4], index: 1, kind: input, shape index: {}]   ;;  %s529_s2 = inlined_call_operand.hbm [shape: f32[8,128], index: 2, kind: output, shape index: {}]  }
   0x1   :  { %8 = vsyncpa [#allocation6], 0 }
   0x2   :  { %9 = vsyncpa [#allocation4], 0 }
   0x3   :  { %20 = vsyncadd [#allocation3], 64  ;;  %s424_s9 = smov [#allocation2]  }
   0x4   :  { %s25_s10 = sshll.u32 %s424_s9, 4  ;;  %s26_s10 = int_to_ptr.vmem [resolvable:$true] %s25_s10 }
   0x5   :  { %s366_s11 = scalar_lea.vmem %s26_s10, 64  ;;  %s370_s12 = scalar_lea.vmem %s26_s10, 128 }
   0x6   :  { %p367_p0 = scmp.ne.s32.totalorder %s26_s10, %s366_s11  ;;  %p371_p1 = scmp.lt.s32.totalorder %s26_s10, %s26_s10 }
   0x7   :  { %p372_p2 = scmp.lt.s32.totalorder %s370_s12, %s366_s11 }
   0x9   :  { %p373_p3 = por %p372_p2, %p371_p1 }
   0xb   :  { %p374_p4 = pnand %p373_p3, %p367_p0 }
   0xd   :  { %377 = shalt.err (!%p374_p4)
}
   0xe   :  { %s425_s13 = smov 64   ;;  %s426_s14 = smov 4  }
   0xf   :  { %31 = dma.hbm_to_vmem [thread:$0]  %s527_s0, 64, %s26_s10, [#allocation3], %s425_s13, %s425_s13, %s426_s14  }
  0x10   :  { %42 = vsyncadd [#allocation6], 64  ;;  %s427_s17 = smov [#allocation5]  }
  0x11   :  { %s47_s18 = sshll.u32 %s427_s17, 4  ;;  %s48_s18 = int_to_ptr.vmem [resolvable:$true] %s47_s18 }
  0x12   :  { %s386_s19 = scalar_lea.vmem %s48_s18, 64  ;;  %s390_s20 = scalar_lea.vmem %s48_s18, 128 }
  0x13   :  { %p387_p5 = scmp.ne.s32.totalorder %s48_s18, %s386_s19  ;;  %p391_p6 = scmp.lt.s32.totalorder %s48_s18, %s48_s18 }
  0x14   :  { %p392_p7 = scmp.lt.s32.totalorder %s390_s20, %s386_s19 }
  0x16   :  { %p393_p8 = por %p392_p7, %p391_p6 }
  0x18   :  { %p394_p9 = pnand %p393_p8, %p387_p5 }
  0x1a   :  { %397 = shalt.err (!%p394_p9)
}
  0x1b   :  { %53 = dma.hbm_to_vmem [thread:$0]  %s528_s1, 64, %s48_s18, [#allocation6], %s425_s13, %s425_s13, %s426_s14  }
  0x1c   :  { %418 = dma.done.wait [#allocation3], 128  }
  0x1d   :  { %419 = vsyncadd [#allocation3], 4294967168 }
  0x1e   :  { %420 = dma.done.wait [#allocation6], 128  }
  0x1f   :  { %421 = vsyncadd [#allocation6], 4294967168  ;;  %v201_v0 = vlaneseq  ;;  %v467_v3 = vld [vmem:[#allocation2] sm:$0xff]  ;;  %v428_v9 = vmov 1   ;;  %v429_v10 = vmov 0   ;;  %v200_v25 = vld [vmem:[#allocation5] sm:$0xff] }
  0x20   :  { %350 = vset.pattern.permute.xlu1 %v428_v9  ;;  %349 = vset.pattern.permute.xlu0 %v429_v10  ;;  %v430_v26 = vmov 2   ;;  %v431_v27 = vmov 3   ;;  %v432_v47 = vmov 0.0   ;;  %s433_s23 = smov [#allocation7]  }
  0x21   :  { %v456_v1 = vand.u32 127, %v201_v0  ;;  %v270_v42 = vshrl.u32 %v201_v0, 7  ;;  %s321_s24 = sshll.u32 %s433_s23, 4  ;;  %s322_s24 = int_to_ptr.vmem [resolvable:$true] %s321_s24 }
  0x22   :  { %s398_s25 = scalar_lea.vmem %s322_s24, 128  ;;  %p403_p11 = scmp.lt.s32.totalorder %s322_s24, %s322_s24 }
  0x23   :  { %vm215_vm0 = vcmp.ge.s32.totalorder %v456_v1, 64  ;;  %vm216_vm1 = vcmp.lt.s32.totalorder %v456_v1, 96  ;;  %vm208_vm2 = vcmp.ge.s32.totalorder %v456_v1, 32  ;;  %vm203_vm3 = vcmp.lt.s32.totalorder %v456_v1, 32  ;;  %p399_p10 = scmp.ne.s32.totalorder %s322_s24, %s398_s25  ;;  %p404_p12 = scmp.lt.s32.totalorder %s398_s25, %s398_s25 }
  0x24   :  { %vm462_vm4 = vmand %vm215_vm0, %vm216_vm1  ;;  %vm209_vm5 = vcmp.lt.s32.totalorder %v456_v1, 64  ;;  %vm222_vm7 = vcmp.ge.s32.totalorder %v456_v1, 96  ;;  %v204_v5 = vsel %vm203_vm3, %v467_v3, -inf  ;;  %v262_v43 = vand.u32 31, %v456_v1 }
  0x25   :  { %vm469_vm6 = vmand %vm208_vm2, %vm209_vm5  ;;  %v218_v6 = vsel %vm462_vm4, %v467_v3, -inf  ;;  %205 = vmax.xlane.f32.xlu0 %v204_v5  ;;  %v223_v8 = vsel %vm222_vm7, %v467_v3, -inf  ;;  %vm273_vm8 = vcmp.lt.s32.totalorder %v270_v42, 4  ;;  %vm304_vm1 = vcmp.eq.s32.totalorder %v270_v42, 0  ;;  %p405_p13 = por %p404_p12, %p403_p11 }
  0x26   :  { %219 = vmax.xlane.f32.xlu1 %v218_v6  ;;  %v211_v7 = vsel %vm469_vm6, %v467_v3, -inf  ;;  %vm279_vm11 = vcmp.eq.s32.totalorder %v262_v43, 0  ;;  %vm307_vm2 = vcmp.eq.s32.totalorder %v456_v1, 1 }
  0x27   :  { %p406_p0 = pnand %p405_p13, %p399_p10 }
  0x29   :  { %212 = vmax.xlane.f32.xlu0 %v211_v7 }
  0x2a   :  { %224 = vmax.xlane.f32.xlu1 %v223_v8 }
  0xae   :  { %v206_v11 = vpop.xlane.xlu0 %205 }
  0xaf   :  { %v220_v12 = vpop.xlane.xlu1 %219  ;;  %v207_v13 = vsel %vm203_vm3, %v206_v11, 0.0 }
  0xb2   :  { %v213_v14 = vpop.xlane.xlu0 %212 }
  0xb3   :  { %v225_v15 = vpop.xlane.xlu1 %224  ;;  %v214_v16 = vsel %vm469_vm6, %v213_v14, %v207_v13 }
  0xb4   :  { %v221_v17 = vsel %vm462_vm4, %v220_v12, %v214_v16 }
  0xb5   :  { %v226_v18 = vsel %vm222_vm7, %v225_v15, %v221_v17 }
  0xb6   :  { %v227_v19 = vsub.f32 %v467_v3, %v226_v18 }
  0xb8   :  { %v228_v20 = vmul.f32 1.442695, %v227_v19 }
  0xba   :  { %354 = vpow2.f32 %v228_v20 }
  0xc7   :  { %v355_v21 = vpop.eup %354 }
  0xc8   :  { %v238_v22 = vsel %vm469_vm6, %v355_v21, 0.0  ;;  %v230_v23 = vsel %vm203_vm3, %v355_v21, 0.0  ;;  %v246_v24 = vsel %vm462_vm4, %v355_v21, 0.0  ;;  %v254_v28 = vsel %vm222_vm7, %v355_v21, 0.0 }
  0xc9   :  { %239 = vadd.xlane.f32.xlu1 %v238_v22  ;;  %231 = vadd.xlane.f32.xlu0 %v230_v23 }
  0xcd   :  { %247 = vadd.xlane.f32.xlu0 %v246_v24 }
  0xda   :  { %243 = vperm.xlu1 %350, %v200_v25  }
  0xde   :  { %351 = vset.pattern.permute.xlu1 %v430_v26 }
  0xdf   :  { %251 = vperm.xlu1 %351, %v200_v25  }
  0xe3   :  { %235 = vperm.xlu0 %349, %v200_v25   ;;  %352 = vset.pattern.permute.xlu1 %v431_v27 }
  0xe7   :  { %353 = vset.pattern.permute.xlu0 %v431_v27 }
 0x103   :  { %255 = vadd.xlane.f32.xlu1 %v254_v28 }
 0x114   :  { %259 = vperm.xlu1 %352, %v200_v25  }
 0x152   :  { %v240_v29 = vpop.xlane.xlu1 %239  ;;  %v232_v30 = vpop.xlane.xlu0 %231 }
 0x153   :  { %v233_v34 = vsel %vm203_vm3, %v232_v30, 1.0 }
 0x154   :  { %v241_v37 = vsel %vm469_vm6, %v240_v29, %v233_v34 }
 0x156   :  { %v244_v31 = vpop.permute.xlu1 %243  ;;  %v248_v32 = vpop.xlane.xlu0 %247 }
 0x157   :  { %v249_v38 = vsel %vm462_vm4, %v248_v32, %v241_v37 }
 0x15a   :  { %v252_v35 = vpop.permute.xlu1 %251 }
 0x15e   :  { %v236_v33 = vpop.permute.xlu0 %235 }
 0x15f   :  { %v237_v36 = vsel %vm203_vm3, %v236_v33, 0  ;;  %vm305_vm3 = vcmp.eq.s32.totalorder %v456_v1, 0 }
 0x160   :  { %v245_v40 = vsel %vm469_vm6, %v244_v31, %v237_v36  ;;  %vm306_vm5 = vmand %vm304_vm1, %vm305_vm3 }
 0x161   :  { %v253_v45 = vsel %vm462_vm4, %v252_v35, %v245_v40  ;;  %vm308_vm4 = vmand %vm304_vm1, %vm307_vm2 }
 0x18c   :  { %v256_v39 = vpop.xlane.xlu1 %255 }
 0x18d   :  { %v257_v41 = vsel %vm222_vm7, %v256_v39, %v249_v38 }
 0x18e   :  { %356 = vlog2.f32 %v257_v41 }
 0x190   :  { %v260_v44 = vpop.permute.xlu1 %259 }
 0x191   :  { %v261_v46 = vsel %vm222_vm7, %v260_v44, %v253_v45 }
 0x192   :  { %vm266_vm9 = vcmp.ge.s32.totalorder %v261_v46, 0  ;;  %vm267_vm10 = vcmp.lt.s32.totalorder %v261_v46, 32  ;;  %vm277_vm15 = vcmp.eq.s32.totalorder %v262_v43, %v261_v46 }
 0x193   :  { %vm268_vm12 = vmand %vm266_vm9, %vm267_vm10 }
 0x194   :  { %vm276_vm13 = vmand %vm268_vm12, %vm273_vm8 }
 0x195   :  { %vm280_vm14 = vmand %vm276_vm13, %vm279_vm11 }
 0x196   :  { %v293_v48 = vsel %vm280_vm14, 1.0, %v432_v47  ;;  %vm278_vm0 = vmand %vm277_vm15, %vm276_vm13 }
 0x197   :  { %294 = vadd.xlane.f32.xlu0 %v293_v48  ;;  %v282_v53 = vsel %vm278_vm0, %v467_v3, 0.0 }
 0x19b   :  { %v357_v49 = vpop.eup %356 }
 0x19c   :  { %v264_v50 = vmul.f32 0.6931472, %v357_v49 }
 0x19e   :  { %v265_v51 = vadd.f32 %v264_v50, %v226_v18 }
 0x1a0   :  { %v281_v52 = vsel %vm280_vm14, %v265_v51, 0.0 }
 0x1a1   :  { %v283_v54 = vsub.f32 %v281_v52, %v282_v53 }
 0x1a3   :  { %284 = vadd.xlane.f32.xlu1 %v283_v54 }
 0x220   :  { %v295_v55 = vpop.xlane.xlu0 %294 }
 0x221   :  { %v296_v56 = vrot.slane %v295_v55, 4 }
 0x223   :  { %v297_v57 = vadd.f32 %v296_v56, %v295_v55 }
 0x225   :  { %v298_v58 = vrot.slane %v297_v57, 2 }
 0x227   :  { %v299_v62 = vadd.f32 %v298_v58, %v297_v57 }
 0x229   :  { %v300_v2 = vrot.slane %v299_v62, 1 }
 0x22b   :  { %v301_v6 = vadd.f32 %v300_v2, %v299_v62 }
 0x22c   :  { %v285_v59 = vpop.xlane.xlu1 %284 }
 0x22d   :  { %v286_v60 = vrot.slane %v285_v59, 4 }
 0x22f   :  { %v287_v61 = vadd.f32 %v286_v60, %v285_v59 }
 0x231   :  { %v288_v63 = vrot.slane %v287_v61, 2 }
 0x233   :  { %v289_v0 = vadd.f32 %v288_v63, %v287_v61 }
 0x235   :  { %v290_v4 = vrot.slane %v289_v0, 1 }
 0x237   :  { %v291_v5 = vadd.f32 %v290_v4, %v289_v0 }
 0x239   :  { %335 = vpush %v291_v5 }
 0x23a   :  { %337 = vpush %v301_v6 }
 0x26a   :  { %s336_s0 = spop %335 }
 0x26b   :  { %v311_v3 = vstv %s336_s0  ;;  %s338_s1 = spop %337 }
 0x26c   :  { %v309_v7 = vstv %s338_s1 }
 0x26d   :  { %v310_v8 = vsel %vm308_vm4, %v309_v7, 0.0 }
 0x26e   :  { %v312_v9 = vsel %vm306_vm5, %v311_v3, %v310_v8 }
 0x26f   :  { %314 = vst [vmem:[#allocation7] sm:$0xff] %v312_v9 }
 0x270   :  { %409 = shalt.err (!%p406_p0)
}
 0x271   :  { %324 = dma.vmem_to_hbm [thread:$0]  %s322_s24, 128, %s529_s2, [#allocation4]  }
 0x272   :  { %422 = dma.done.wait [#allocation4], 128  }
 0x273   :  { %423 = vsyncadd [#allocation4], 4294967168 }
 0x274   :  { %328 = vsyncpa [#allocation3], 1 }
 0x275   :  { %329 = vsyncpa [#allocation6], 1 }
 0x276   :  { %330 = vsyncpa [#allocation4], 1 }

</bundles_post_ra>
